<compile_context>
chip_gen: v6e
topology: v6e:2x2x1
jax: 0.10.0
libtpu: 0.0.40
codegen_flags: <defaults>
</compile_context>

<pallas_src>
import math

import jax
import jax.numpy as jnp
from jax.experimental import pallas as pl
from jax.experimental.pallas import tpu as pltpu

LANE = 128  # lane width for all kernel-facing padded dims


def _round_up(x, m):
    return ((x + m - 1) // m) * m


def _pad_2d(w, rows, cols):
    return jnp.pad(w, ((0, rows - w.shape[0]), (0, cols - w.shape[1])))


# ----------------------------------------------------------------------------
# Fused kernel (one grid step = TM batch rows):
#   act_ref : (TM, 256)  bf16   [:, :128] = pooled vision act, [:, 128:] = text
#   w_ref   : (128, 512) bf16   [vis_enc | vis_proj | txt_enc | txt_proj]
#   b_ref   : (8, 128)   f32    rows 0..3 = vis_enc_b, vis_proj_b, txt_enc_b, txt_proj_b
#   out_ref : (TM, 256)  f32    [:, :128] = img_emb (padded), [:, 128:] = txt_emb
# ----------------------------------------------------------------------------
def make_clip_kernel(proj_dim):
    def clip_fused_kernel(act_ref, w_ref, b_ref, out_ref):
        act = act_ref[...]                       # (TM, 256) bf16
        w = w_ref[...]                           # (128, 512) bf16 (VMEM-resident)
        bias = b_ref[...]                        # (8, 128)  f32

        vis_x = act[:, 0:LANE]
        txt_x = act[:, LANE:2 * LANE]
        w_ve, w_vp = w[:, 0:LANE], w[:, LANE:2 * LANE]
        w_te, w_tp = w[:, 2 * LANE:3 * LANE], w[:, 3 * LANE:4 * LANE]
        b_ve, b_vp = bias[0:1, :], bias[1:2, :]
        b_te, b_tp = bias[2:3, :], bias[3:4, :]

        # Lane mask: only the first proj_dim output lanes participate in the
        # L2 norm (robust even if padding were ever non-zero-preserving).
        lane_idx = jax.lax.broadcasted_iota(jnp.int32, (1, LANE), 1)
        lane_mask = lane_idx < proj_dim

        def encode_project_normalize(x_bf16, w_enc, b_enc, w_proj, b_proj):
            # encoder stand-in: linear -> tanh (f32 elementwise)
            feats = jnp.tanh(
                jnp.dot(x_bf16, w_enc, preferred_element_type=jnp.float32) + b_enc)
            # projection Linear (x @ W^T + b), bf16 MXU operands, f32 accumulate
            z = jnp.dot(feats.astype(jnp.bfloat16), w_proj,
                        preferred_element_type=jnp.float32) + b_proj
            z = jnp.where(lane_mask, z, 0.0)
            sumsq = jnp.sum(z * z, axis=-1, keepdims=True)
            # F.normalize(dim=-1): z / max(||z||, 1e-12) == z * rsqrt(max(sumsq, 1e-24))
            return z * jax.lax.rsqrt(jnp.maximum(sumsq, 1e-24))

        img = encode_project_normalize(vis_x, w_ve, b_ve, w_vp, b_vp)
        txt = encode_project_normalize(txt_x, w_te, b_te, w_tp, b_tp)
        out_ref[...] = jnp.concatenate([img, txt], axis=-1)   # lane-dense (TM, 256)

    return clip_fused_kernel


def run_local_clip(act, w_packed, b_packed, *, proj_dim, tm):
    b_pad = act.shape[0]
    grid = (b_pad // tm,)

    cost = pl.CostEstimate(
        flops=4 * 2 * b_pad * LANE * LANE,                 # 4 (TMx128)@(128x128) matmuls
        transcendentals=2 * b_pad * LANE + 2 * b_pad,      # tanh + rsqrt
        bytes_accessed=(act.size * 2 + w_packed.size * 2
                        + b_packed.size * 4 + b_pad * 2 * LANE * 4),
    )

    return pl.pallas_call(
        make_clip_kernel(proj_dim),
        out_shape=jax.ShapeDtypeStruct((b_pad, 2 * LANE), jnp.float32),
        grid_spec=pltpu.PrefetchScalarGridSpec(
            num_scalar_prefetch=0,
            grid=grid,
            in_specs=[
                pl.BlockSpec((tm, 2 * LANE), lambda b: (b, 0)),       # activations
                pl.BlockSpec((LANE, 4 * LANE), lambda b: (0, 0)),     # weights, resident
                pl.BlockSpec((8, LANE), lambda b: (0, 0)),            # biases, resident
            ],
            out_specs=pl.BlockSpec((tm, 2 * LANE), lambda b: (b, 0)),
        ),
        compiler_params=pltpu.CompilerParams(
            dimension_semantics=("parallel",)),   # megacore split on v7x
        cost_estimate=cost,
    )(act, w_packed, b_packed)


# ----------------------------------------------------------------------------
# Full LocalCLIP-style forward (token pooling / layout glue + fused kernel).
# ----------------------------------------------------------------------------
def local_clip_forward(params, batch):
    images = batch["images"]                  # [B, C, H, W]  (NCHW)
    input_ids = batch["input_ids"]            # [B, S] int32
    attention_mask = batch["attention_mask"]  # [B, S] int32

    B, C, H, W = images.shape
    p = params["patch"]
    nh, nw = H // p, W // p
    din = C * p * p
    ht = params["txt_hidden"]
    d = params["proj_dim"]

    # Vision pooled stand-in "CLS": patch-mean + learned CLS token (reduction
    # hoisted to XLA so the kernel never sees per-token data).
    patches = images.reshape(B, C, nh, p, nw, p)
    patches = patches.transpose(0, 2, 4, 1, 3, 5).reshape(B, nh * nw, din)
    vis_x = jnp.mean(patches, axis=1) + params["vis_cls"]          # [B, din]

    # Text pooled stand-in "CLS": masked mean of token embeddings.
    tok = jnp.take(params["txt_embed"], input_ids, axis=0)          # [B, S, ht]
    m = attention_mask.astype(jnp.float32)
    wgt = m / jnp.maximum(jnp.sum(m, axis=-1, keepdims=True), 1.0)
    txt_x = jnp.einsum("bs,bsh->bh", wgt, tok)                      # [B, ht]

    # Pack both pooled activations lane-dense into (B_pad, 256) bf16.
    tm = 128 if B >= 128 else _round_up(B, 8)
    b_pad = _round_up(B, tm)
    act = jnp.zeros((b_pad, 2 * LANE), jnp.bfloat16)
    act = act.at[:B, :din].set(vis_x.astype(jnp.bfloat16))
    act = act.at[:B, LANE:LANE + ht].set(txt_x.astype(jnp.bfloat16))

    out = run_local_clip(act, params["w_packed"], params["b_packed"],
                         proj_dim=d, tm=tm)

    img_emb = out[:B, :d]
    txt_emb = out[:B, LANE:LANE + d]
    scale = jnp.exp(params["logit_scale"])    # single scalar -> stays in wrapper
    return img_emb, txt_emb, scale


def init_params(key, *, C=3, patch=4, hv=32, ht=32, proj_dim=16, vocab=64):
    ks = jax.random.split(key, 8)
    din = C * patch * patch
    vis_cls = 0.02 * jax.random.normal(ks[0], (din,), jnp.float32)
    vis_enc_w = 0.05 * jax.random.normal(ks[1], (din, hv), jnp.float32)
    txt_embed = 0.05 * jax.random.normal(ks[2], (vocab, ht), jnp.float32)
    txt_enc_w = 0.05 * jax.random.normal(ks[3], (ht, ht), jnp.float32)
    # nn.Linear stores [out_features, in_features]; transpose to [in, out] so
    # the kernel computes x @ W^T + b with a plain matmul.
    vis_proj_w = 0.05 * jax.random.normal(ks[4], (proj_dim, hv), jnp.float32)
    vis_proj_b = 0.01 * jax.random.normal(ks[5], (proj_dim,), jnp.float32)
    txt_proj_w = 0.05 * jax.random.normal(ks[6], (proj_dim, ht), jnp.float32)
    txt_proj_b = 0.01 * jax.random.normal(ks[7], (proj_dim,), jnp.float32)

    # Pack the four weight panels (zero-padded to 128x128) into one bf16
    # (128, 512) array and the four biases into one f32 (8, 128) tile.
    w_packed = jnp.concatenate([
        _pad_2d(vis_enc_w, LANE, LANE),
        _pad_2d(vis_proj_w.T, LANE, LANE),
        _pad_2d(txt_enc_w, LANE, LANE),
        _pad_2d(txt_proj_w.T, LANE, LANE),
    ], axis=1).astype(jnp.bfloat16)

    b_packed = jnp.zeros((8, LANE), jnp.float32)
    b_packed = b_packed.at[1, :proj_dim].set(vis_proj_b)   # row 0/2: enc biases == 0
    b_packed = b_packed.at[3, :proj_dim].set(txt_proj_b)

    return {
        "patch": patch,
        "proj_dim": proj_dim,
        "txt_hidden": ht,
        "vis_cls": vis_cls,
        "txt_embed": txt_embed,
        "logit_scale": jnp.array(math.log(1.0 / 0.07), jnp.float32),
        "w_packed": w_packed,
        "b_packed": b_packed,
    }


if __name__ == "__main__":
    key = jax.random.PRNGKey(0)
    k_img, k_ids, k_par = jax.random.split(key, 3)

    B, C, H, W = 2, 3, 16, 16
    S_TXT, VOCAB = 8, 64

    batch = {
        "images": jax.random.normal(k_img, (B, C, H, W), jnp.float32),
        "input_ids": jax.random.randint(k_ids, (B, S_TXT), 0, VOCAB, jnp.int32),
        "attention_mask": jnp.array(
            [[1, 1, 1, 1, 1, 1, 1, 1],
             [1, 1, 1, 1, 1, 0, 0, 0]], jnp.int32),
    }
    params = init_params(k_par, C=C, vocab=VOCAB)

    img_emb, txt_emb, scale = local_clip_forward(params, batch)
    jax.block_until_ready((img_emb, txt_emb, scale))

    # sanity: embeddings are unit-norm, scale == exp(log(1/0.07))
    assert img_emb.shape == (B, 16) and txt_emb.shape == (B, 16)
    assert bool(jnp.allclose(jnp.linalg.norm(img_emb, axis=-1), 1.0, atol=1e-5))
    assert bool(jnp.allclose(jnp.linalg.norm(txt_emb, axis=-1), 1.0, atol=1e-5))
    assert bool(jnp.allclose(scale, 1.0 / 0.07, rtol=1e-5))

    print("KERNEL_OK")
</pallas_src>

<mosaic_0001>
module attributes {stable_mosaic.version = 11 : i64} {
  func.func @clip_fused_kernel(%arg0: i32, %arg1: memref<8x256xbf16, #tpu.memory_space<vmem>>, %arg2: memref<128x512xbf16, #tpu.memory_space<vmem>>, %arg3: memref<8x128xf32, #tpu.memory_space<vmem>>, %arg4: memref<8x256xf32, #tpu.memory_space<vmem>>) attributes {dimension_semantics = [#tpu.dimension_semantics<parallel>], iteration_bounds = array<i64: 1>, scalar_prefetch = 0 : i64, scratch_operands = 0 : i64, tpu.core_type = #tpu.core_type<tc>, window_params = [{transform_indices = @transform_0, window_bounds = array<i64: 8, 256>}, {pipeline_mode = #tpu.pipeline_mode<synchronous>, transform_indices = @transform_1, window_bounds = array<i64: 128, 512>}, {pipeline_mode = #tpu.pipeline_mode<synchronous>, transform_indices = @transform_2, window_bounds = array<i64: 8, 128>}, {transform_indices = @transform_3, window_bounds = array<i64: 8, 256>}]} {
    %c0 = arith.constant 0 : index
    %c0_0 = arith.constant 0 : index
    %0 = vector.load %arg1[%c0, %c0_0] : memref<8x256xbf16, #tpu.memory_space<vmem>>, vector<8x256xbf16>
    %c0_1 = arith.constant 0 : index
    %c0_2 = arith.constant 0 : index
    %1 = vector.load %arg2[%c0_1, %c0_2] : memref<128x512xbf16, #tpu.memory_space<vmem>>, vector<128x512xbf16>
    %c0_3 = arith.constant 0 : index
    %c0_4 = arith.constant 0 : index
    %2 = vector.load %arg3[%c0_3, %c0_4] : memref<8x128xf32, #tpu.memory_space<vmem>>, vector<8x128xf32>
    %3 = vector.extract_strided_slice %0 {offsets = [0, 0], sizes = [8, 128], strides = [1, 1]} : vector<8x256xbf16> to vector<8x128xbf16>
    %4 = vector.extract_strided_slice %0 {offsets = [0, 128], sizes = [8, 128], strides = [1, 1]} : vector<8x256xbf16> to vector<8x128xbf16>
    %5 = vector.extract_strided_slice %1 {offsets = [0, 0], sizes = [128, 128], strides = [1, 1]} : vector<128x512xbf16> to vector<128x128xbf16>
    %6 = vector.extract_strided_slice %1 {offsets = [0, 128], sizes = [128, 128], strides = [1, 1]} : vector<128x512xbf16> to vector<128x128xbf16>
    %7 = vector.extract_strided_slice %1 {offsets = [0, 256], sizes = [128, 128], strides = [1, 1]} : vector<128x512xbf16> to vector<128x128xbf16>
    %8 = vector.extract_strided_slice %1 {offsets = [0, 384], sizes = [128, 128], strides = [1, 1]} : vector<128x512xbf16> to vector<128x128xbf16>
    %9 = vector.extract_strided_slice %2 {offsets = [0, 0], sizes = [1, 128], strides = [1, 1]} : vector<8x128xf32> to vector<1x128xf32>
    %10 = vector.extract_strided_slice %2 {offsets = [1, 0], sizes = [1, 128], strides = [1, 1]} : vector<8x128xf32> to vector<1x128xf32>
    %11 = vector.extract_strided_slice %2 {offsets = [2, 0], sizes = [1, 128], strides = [1, 1]} : vector<8x128xf32> to vector<1x128xf32>
    %12 = vector.extract_strided_slice %2 {offsets = [3, 0], sizes = [1, 128], strides = [1, 1]} : vector<8x128xf32> to vector<1x128xf32>
    %13 = tpu.iota {dimensions = array<i32: 1>} : vector<1x128xi32>
    %c16_i32 = arith.constant 16 : i32
    %14 = vector.broadcast %c16_i32 : i32 to vector<1x128xi32>
    %15 = arith.cmpi slt, %13, %14 : vector<1x128xi32>
    %cst = arith.constant dense<0.000000e+00> : vector<8x128xf32>
    %16 = tpu.matmul %3, %5, %cst {dimension_numbers = #tpu.dot_dimension_numbers<[1], [0], [0], [1], [0, 0, 1, 1], [], []>} : vector<8x128xbf16>, vector<128x128xbf16>, vector<8x128xf32> -> vector<8x128xf32>
    %17 = vector.broadcast %9 : vector<1x128xf32> to vector<8x128xf32>
    %18 = arith.addf %16, %17 : vector<8x128xf32>
    %19 = math.tanh %18 : vector<8x128xf32>
    %20 = arith.truncf %19 : vector<8x128xf32> to vector<8x128xbf16>
    %cst_5 = arith.constant dense<0.000000e+00> : vector<8x128xf32>
    %21 = tpu.matmul %20, %6, %cst_5 {dimension_numbers = #tpu.dot_dimension_numbers<[1], [0], [0], [1], [0, 0, 1, 1], [], []>} : vector<8x128xbf16>, vector<128x128xbf16>, vector<8x128xf32> -> vector<8x128xf32>
    %22 = vector.broadcast %10 : vector<1x128xf32> to vector<8x128xf32>
    %23 = arith.addf %21, %22 : vector<8x128xf32>
    %cst_6 = arith.constant 0.000000e+00 : f32
    %24 = vector.shape_cast %15 : vector<1x128xi1> to vector<1x128xi1>
    %25 = vector.broadcast %24 : vector<1x128xi1> to vector<8x128xi1>
    %26 = vector.broadcast %cst_6 : f32 to vector<8x128xf32>
    %27 = arith.select %25, %23, %26 : vector<8x128xi1>, vector<8x128xf32>
    %28 = arith.mulf %27, %27 : vector<8x128xf32>
    %cst_7 = arith.constant dense<0.000000e+00> : vector<8xf32>
    %29 = vector.multi_reduction <add>, %28, %cst_7 [1] : vector<8x128xf32> to vector<8xf32>
    %30 = vector.shape_cast %29 : vector<8xf32> to vector<8x1xf32>
    %cst_8 = arith.constant 1.000000e-24 : f32
    %31 = vector.broadcast %cst_8 : f32 to vector<8x1xf32>
    %32 = arith.maximumf %30, %31 : vector<8x1xf32>
    %33 = math.rsqrt %32 : vector<8x1xf32>
    %34 = vector.broadcast %33 : vector<8x1xf32> to vector<8x128xf32>
    %35 = arith.mulf %27, %34 : vector<8x128xf32>
    %cst_9 = arith.constant dense<0.000000e+00> : vector<8x128xf32>
    %36 = tpu.matmul %4, %7, %cst_9 {dimension_numbers = #tpu.dot_dimension_numbers<[1], [0], [0], [1], [0, 0, 1, 1], [], []>} : vector<8x128xbf16>, vector<128x128xbf16>, vector<8x128xf32> -> vector<8x128xf32>
    %37 = vector.broadcast %11 : vector<1x128xf32> to vector<8x128xf32>
    %38 = arith.addf %36, %37 : vector<8x128xf32>
    %39 = math.tanh %38 : vector<8x128xf32>
    %40 = arith.truncf %39 : vector<8x128xf32> to vector<8x128xbf16>
    %cst_10 = arith.constant dense<0.000000e+00> : vector<8x128xf32>
    %41 = tpu.matmul %40, %8, %cst_10 {dimension_numbers = #tpu.dot_dimension_numbers<[1], [0], [0], [1], [0, 0, 1, 1], [], []>} : vector<8x128xbf16>, vector<128x128xbf16>, vector<8x128xf32> -> vector<8x128xf32>
    %42 = vector.broadcast %12 : vector<1x128xf32> to vector<8x128xf32>
    %43 = arith.addf %41, %42 : vector<8x128xf32>
    %cst_11 = arith.constant 0.000000e+00 : f32
    %44 = vector.shape_cast %15 : vector<1x128xi1> to vector<1x128xi1>
    %45 = vector.broadcast %44 : vector<1x128xi1> to vector<8x128xi1>
    %46 = vector.broadcast %cst_11 : f32 to vector<8x128xf32>
    %47 = arith.select %45, %43, %46 : vector<8x128xi1>, vector<8x128xf32>
    %48 = arith.mulf %47, %47 : vector<8x128xf32>
    %cst_12 = arith.constant dense<0.000000e+00> : vector<8xf32>
    %49 = vector.multi_reduction <add>, %48, %cst_12 [1] : vector<8x128xf32> to vector<8xf32>
    %50 = vector.shape_cast %49 : vector<8xf32> to vector<8x1xf32>
    %cst_13 = arith.constant 1.000000e-24 : f32
    %51 = vector.broadcast %cst_13 : f32 to vector<8x1xf32>
    %52 = arith.maximumf %50, %51 : vector<8x1xf32>
    %53 = math.rsqrt %52 : vector<8x1xf32>
    %54 = vector.broadcast %53 : vector<8x1xf32> to vector<8x128xf32>
    %55 = arith.mulf %47, %54 : vector<8x128xf32>
    %56 = tpu.concatenate %35, %55 in 1 : vector<8x128xf32>, vector<8x128xf32> -> vector<8x256xf32>
    %c0_14 = arith.constant 0 : index
    %c0_15 = arith.constant 0 : index
    %57 = vector.load %arg4[%c0_14, %c0_15] : memref<8x256xf32, #tpu.memory_space<vmem>>, vector<8x256xf32>
    tpu.vector_store %arg4[%c0_14, %c0_15], %56 {strides = array<i32>} : memref<8x256xf32, #tpu.memory_space<vmem>>, vector<8x256xf32>,
    return
  }
  func.func @transform_0(%arg0: i32) -> (i32, i32) {
    %c0_i32 = arith.constant 0 : i32
    %c0_i32_0 = arith.constant 0 : i32
    return %arg0, %c0_i32 : i32, i32
  }
  func.func @transform_1(%arg0: i32) -> (i32, i32) {
    %c0_i32 = arith.constant 0 : i32
    %c0_i32_0 = arith.constant 0 : i32
    %c0_i32_1 = arith.constant 0 : i32
    return %c0_i32, %c0_i32_0 : i32, i32
  }
  func.func @transform_2(%arg0: i32) -> (i32, i32) {
    %c0_i32 = arith.constant 0 : i32
    %c0_i32_0 = arith.constant 0 : i32
    %c0_i32_1 = arith.constant 0 : i32
    return %c0_i32, %c0_i32_0 : i32, i32
  }
  func.func @transform_3(%arg0: i32) -> (i32, i32) {
    %c0_i32 = arith.constant 0 : i32
    %c0_i32_0 = arith.constant 0 : i32
    return %arg0, %c0_i32 : i32, i32
  }
}

</mosaic_0001>

<bundles_post_ra>
// kernel: tpu_custom_call.1
= control target key start
LH: loop header
LB: loop body
LE: loop exit
PB: predicated region body
PF: predicated region fallthrough
CT: control target
= control target key end

     0   :  { %8 = vsyncpa [#allocation3], 0  ;;  %s848_s0 = inlined_call_operand.hbm [shape: bf16[8,256], index: 0, kind: input, shape index: {}]   ;;  %s849_s1 = inlined_call_operand.hbm [shape: bf16[128,512], index: 1, kind: input, shape index: {}]   ;;  %s850_s2 = inlined_call_operand.hbm [shape: f32[8,128], index: 2, kind: input, shape index: {}]   ;;  %s851_s3 = inlined_call_operand.hbm [shape: f32[8,256], index: 3, kind: output, shape index: {}]  }
   0x1   :  { %9 = vsyncpa [#allocation6], 0 }
   0x2   :  { %10 = vsyncpa [#allocation4], 0  ;;  %s768_s12 = smov [#allocation5]  }
   0x3   :  { %s26_s13 = sshll.u32 %s768_s12, 4  ;;  %s27_s13 = int_to_ptr.vmem [resolvable:$true] %s26_s13 }
   0x4   :  { %s690_s14 = scalar_lea.vmem %s27_s13, 4096  ;;  %p695_p1 = scmp.lt.s32.totalorder %s27_s13, %s27_s13 }
   0x5   :  { %p691_p0 = scmp.ne.s32.totalorder %s27_s13, %s690_s14  ;;  %p696_p2 = scmp.lt.s32.totalorder %s690_s14, %s690_s14 }
   0x7   :  { %p697_p3 = por %p696_p2, %p695_p1 }
   0x9   :  { %p698_p4 = pnand %p697_p3, %p691_p0 }
   0xb   :  { %701 = shalt.err (!%p698_p4)
}
   0xc   :  { %s769_s15 = smov 256   ;;  %s770_s16 = smov 16  }
   0xd   :  { %32 = dma.hbm_to_vmem [thread:$0]  %s849_s1, 4096, %s27_s13, [#allocation6], %s769_s15, %s769_s15, %s770_s16  }
   0xe   :  { %s771_s19 = smov [#allocation2]   ;;  %s772_s21 = smov [#allocation7]  }
   0xf   :  { %s17_s20 = sshll.u32 %s771_s19, 4  ;;  %s39_s22 = sshll.u32 %s772_s21, 4  ;;  %s18_s20 = int_to_ptr.vmem [resolvable:$true] %s17_s20  ;;  %s40_s22 = int_to_ptr.vmem [resolvable:$true] %s39_s22 }
  0x10   :  { %s710_s23 = scalar_lea.vmem %s18_s20, 128  ;;  %p715_p6 = scmp.lt.s32.totalorder %s18_s20, %s18_s20 }
  0x11   :  { %p711_p5 = scmp.ne.s32.totalorder %s18_s20, %s710_s23  ;;  %p716_p7 = scmp.lt.s32.totalorder %s710_s23, %s710_s23 }
  0x13   :  { %p717_p8 = por %p716_p7, %p715_p6 }
  0x15   :  { %p718_p9 = pnand %p717_p8, %p711_p5 }
  0x17   :  { %721 = shalt.err (!%p718_p9)
}
  0x18   :  { %20 = dma.hbm_to_vmem [thread:$0]  %s848_s0, 128, %s18_s20, [#allocation3]  }
  0x19   :  { %s730_s26 = scalar_lea.vmem %s40_s22, 128  ;;  %p735_p11 = scmp.lt.s32.totalorder %s40_s22, %s40_s22 }
  0x1a   :  { %p731_p10 = scmp.ne.s32.totalorder %s40_s22, %s730_s26  ;;  %p736_p12 = scmp.lt.s32.totalorder %s730_s26, %s730_s26 }
  0x1c   :  { %p737_p13 = por %p736_p12, %p735_p11 }
  0x1e   :  { %p738_p0 = pnand %p737_p13, %p731_p10 }
  0x20   :  { %741 = shalt.err (!%p738_p0)
}
  0x21   :  { %42 = dma.hbm_to_vmem [thread:$0]  %s850_s2, 128, %s40_s22, [#allocation6]  }
  0x22   :  { %762 = dma.done.wait [#allocation3], 128  }
  0x23   :  { %763 = vsyncadd [#allocation3], 4294967168 }
  0x24   :  { %764 = dma.done.wait [#allocation6], 4224  }
  0x25   :  { %765 = vsyncadd [#allocation6], 4294963072  ;;  %v773_v0 = vmov 0.0   ;;  %vm774_vm0 = vmmov 0   ;;  %v625_v1 = vld [vmem:[#allocation5 + $0xe0] ss:$16 sps:$4 sm:$0xff]   ;;  %v87_v27 = vlaneseq }
  0x26   :  { %537 = vmatprep.subr.bf16.mxu0 %v773_v0  ;;  %553 = vmatprep.mubr.msk.bf16.mxu0 %vm774_vm0, %v773_v0  ;;  %v627_v2 = vld [vmem:[#allocation5 + $0xc0] ss:$16 sps:$4 sm:$0xff]   ;;  %v658_v6 = vld [vmem:[#allocation5 + $0xe4] ss:$16 sps:$4 sm:$0xff]   ;;  %v53_v12 = vld [vmem:[#allocation2] sm:$0xff]  ;;  %s775_s0 = smov [#allocation8]  }
  0x27   :  { %557 = vmatprep.subr.bf16.mxu1 %v773_v0  ;;  %573 = vmatprep.mubr.msk.bf16.mxu1 %vm774_vm0, %v773_v0  ;;  %v629_v3 = vld [vmem:[#allocation5 + $0xa0] ss:$16 sps:$4 sm:$0xff]   ;;  %v659_v8 = vld [vmem:[#allocation5 + $0xc4] ss:$16 sps:$4 sm:$0xff]   ;;  %v642_v13 = vld [vmem:[#allocation5 + $0xe8] ss:$16 sps:$4 sm:$0xff]   ;;  %v484_v21 = vcombine.high %v53_v12, %v53_v12 }
  0x28   :  { %538 = vmatpush3.bf16.msra.mxu0 %v625_v1  ;;  %v631_v4 = vld [vmem:[#allocation5 + $0x80] ss:$16 sps:$4 sm:$0xff]   ;;  %558 = vmatpush3.bf16.msra.mxu1 %v658_v6  ;;  %v660_v10 = vld [vmem:[#allocation5 + $0xa4] ss:$16 sps:$4 sm:$0xff]   ;;  %v644_v14 = vld [vmem:[#allocation5 + $0xc8] ss:$16 sps:$4 sm:$0xff]  }
  0x29   :  { %539 = vmatprep.subr.bf16.mxu0 %v773_v0  ;;  %v633_v5 = vld [vmem:[#allocation5 + $0x60] ss:$16 sps:$4 sm:$0xff]   ;;  %559 = vmatprep.subr.bf16.mxu1 %v773_v0  ;;  %v646_v15 = vld [vmem:[#allocation5 + $0xa8] ss:$16 sps:$4 sm:$0xff]   ;;  %v661_v22 = vld [vmem:[#allocation5 + $0x84] ss:$16 sps:$4 sm:$0xff]  }
  0x2a   :  { %v635_v7 = vld [vmem:[#allocation5 + $0x40] ss:$16 sps:$4 sm:$0xff]   ;;  %v648_v16 = vld [vmem:[#allocation5 + $0x88] ss:$16 sps:$4 sm:$0xff]   ;;  %v662_v23 = vld [vmem:[#allocation5 + $0x64] ss:$16 sps:$4 sm:$0xff]  }
  0x2b   :  { %v637_v9 = vld [vmem:[#allocation5 + $0x20] ss:$16 sps:$4 sm:$0xff]   ;;  %v650_v17 = vld [vmem:[#allocation5 + $0x68] ss:$16 sps:$4 sm:$0xff]   ;;  %v663_v24 = vld [vmem:[#allocation5 + $0x44] ss:$16 sps:$4 sm:$0xff]  }
  0x2c   :  { %540 = vmatpush3.bf16.msra.mxu0 %v627_v2  ;;  %560 = vmatpush3.bf16.msra.mxu1 %v659_v8  ;;  %v639_v11 = vld [vmem:[#allocation5] ss:$16 sps:$4 sm:$0xff]   ;;  %v652_v18 = vld [vmem:[#allocation5 + $0x48] ss:$16 sps:$4 sm:$0xff]   ;;  %v664_v25 = vld [vmem:[#allocation5 + $0x24] ss:$16 sps:$4 sm:$0xff]  }
  0x2d   :  { %541 = vmatprep.subr.bf16.mxu0 %v773_v0  ;;  %561 = vmatprep.subr.bf16.mxu1 %v773_v0  ;;  %v654_v19 = vld [vmem:[#allocation5 + $0x28] ss:$16 sps:$4 sm:$0xff]   ;;  %v665_v26 = vld [vmem:[#allocation5 + $0x4] ss:$16 sps:$4 sm:$0xff]   ;;  %v91_v28 = vshrl.u32 %v87_v27, 7  ;;  %v88_v57 = vand.u32 127, %v87_v27 }
  0x2e   :  { %v656_v20 = vld [vmem:[#allocation5 + $0x8] ss:$16 sps:$4 sm:$0xff]   ;;  %v86_v30 = vld [vmem:[#allocation7] sm:$0xff]  ;;  %v666_v38 = vld [vmem:[#allocation5 + $0xec] ss:$16 sps:$4 sm:$0xff]   ;;  %s458_s2 = sshll.u32 %s775_s0, 4  ;;  %s459_s2 = int_to_ptr.vmem [resolvable:$true] %s458_s2 }
  0x2f   :  { %v92_v29 = vsub.s32 0, %v91_v28  ;;  %v667_v40 = vld [vmem:[#allocation5 + $0xcc] ss:$16 sps:$4 sm:$0xff]   ;;  %v271_v42 = vsub.s32 2, %v91_v28  ;;  %v186_v56 = vsub.s32 1, %v91_v28  ;;  %vm89_vm1 = vcmp.lt.s32.totalorder %v88_v57, 16  ;;  %p747_p2 = scmp.lt.s32.totalorder %s459_s2, %s459_s2 }
  0x30   :  { %542 = vmatpush3.bf16.msra.mxu0 %v629_v3  ;;  %562 = vmatpush3.bf16.msra.mxu1 %v660_v10  ;;  %v668_v41 = vld [vmem:[#allocation5 + $0xac] ss:$16 sps:$4 sm:$0xff]   ;;  %v369_v3 = vsub.s32 3, %v91_v28  ;;  %s742_s28 = scalar_lea.vmem %s459_s2, 256 }
  0x31   :  { %543 = vmatprep.subr.bf16.mxu0 %v773_v0  ;;  %563 = vmatprep.subr.bf16.mxu1 %v773_v0  ;;  %v93_v31 = vrot.slane %v86_v30, %v92_v29  ;;  %v669_v43 = vld [vmem:[#allocation5 + $0x8c] ss:$16 sps:$4 sm:$0xff]   ;;  %v272_v44 = vrot.slane %v86_v30, %v271_v42  ;;  %v187_v58 = vrot.slane %v86_v30, %v186_v56  ;;  %p743_p1 = scmp.ne.s32.totalorder %s459_s2, %s742_s28  ;;  %p748_p3 = scmp.lt.s32.totalorder %s742_s28, %s742_s28 }
  0x32   :  { %v670_v46 = vld [vmem:[#allocation5 + $0x6c] ss:$16 sps:$4 sm:$0xff]  }
  0x33   :  { %v671_v50 = vld [vmem:[#allocation5 + $0x4c] ss:$16 sps:$4 sm:$0xff]   ;;  %p749_p4 = por %p748_p3, %p747_p2 }
  0x34   :  { %544 = vmatpush3.bf16.msra.mxu0 %v631_v4  ;;  %564 = vmatpush3.bf16.msra.mxu1 %v661_v22  ;;  %v672_v52 = vld [vmem:[#allocation5 + $0x2c] ss:$16 sps:$4 sm:$0xff]   ;;  %v370_v4 = vrot.slane %v86_v30, %v369_v3 }
  0x35   :  { %545 = vmatprep.subr.bf16.mxu0 %v773_v0  ;;  %565 = vmatprep.subr.bf16.mxu1 %v773_v0  ;;  %v673_v53 = vld [vmem:[#allocation5 + $0xc] ss:$16 sps:$4 sm:$0xff]   ;;  %p750_p5 = pnand %p749_p4, %p743_p1 }
  0x38   :  { %546 = vmatpush3.bf16.msra.mxu0 %v633_v5  ;;  %566 = vmatpush3.bf16.msra.mxu1 %v662_v23 }
  0x39   :  { %547 = vmatprep.subr.bf16.mxu0 %v773_v0  ;;  %567 = vmatprep.subr.bf16.mxu1 %v773_v0 }
  0x3c   :  { %548 = vmatpush3.bf16.msra.mxu0 %v635_v7  ;;  %568 = vmatpush3.bf16.msra.mxu1 %v663_v24 }
  0x3d   :  { %549 = vmatprep.subr.bf16.mxu0 %v773_v0  ;;  %569 = vmatprep.subr.bf16.mxu1 %v773_v0 }
  0x40   :  { %550 = vmatpush3.bf16.msra.mxu0 %v637_v9  ;;  %570 = vmatpush3.bf16.msra.mxu1 %v664_v25 }
  0x41   :  { %551 = vmatprep.subr.bf16.mxu0 %v773_v0  ;;  %571 = vmatprep.subr.bf16.mxu1 %v773_v0 }
  0x44   :  { %552 = vmatpush3.bf16.msra.mxu0 %v639_v11  ;;  %572 = vmatpush3.bf16.msra.mxu1 %v665_v26 }
  0x45   :  { %577 = vmatprep.subr.bf16.mxu0 %v773_v0  ;;  %597 = vmatprep.subr.bf16.mxu1 %v773_v0 }
  0x47   :  { %554 = vmatmul.mubr.bf16.vlgmr.msra.gmra.mxu0 %v53_v12 }
  0x48   :  { %578 = vmatpush3.bf16.msra.mxu0 %v642_v13  ;;  %593 = vmatprep.mubr.msk.bf16.mxu0 %vm774_vm0, %v773_v0 }
  0x49   :  { %579 = vmatprep.subr.bf16.mxu0 %v773_v0 }
  0x4c   :  { %580 = vmatpush3.bf16.msra.mxu0 %v644_v14 }
  0x4d   :  { %581 = vmatprep.subr.bf16.mxu0 %v773_v0 }
  0x50   :  { %582 = vmatpush3.bf16.msra.mxu0 %v646_v15 }
  0x51   :  { %583 = vmatprep.subr.bf16.mxu0 %v773_v0 }
  0x54   :  { %584 = vmatpush3.bf16.msra.mxu0 %v648_v16 }
  0x55   :  { %585 = vmatprep.subr.bf16.mxu0 %v773_v0 }
  0x58   :  { %586 = vmatpush3.bf16.msra.mxu0 %v650_v17 }
  0x59   :  { %587 = vmatprep.subr.bf16.mxu0 %v773_v0 }
  0x5c   :  { %588 = vmatpush3.bf16.msra.mxu0 %v652_v18 }
  0x5d   :  { %589 = vmatprep.subr.bf16.mxu0 %v773_v0 }
  0x60   :  { %590 = vmatpush3.bf16.msra.mxu0 %v654_v19 }
  0x61   :  { %591 = vmatprep.subr.bf16.mxu0 %v773_v0 }
  0x64   :  { %592 = vmatpush3.bf16.msra.mxu0 %v656_v20 }
  0x67   :  { %594 = vmatmul.mubr.bf16.vlgmr.msra.gmra.mxu0 %v484_v21 }
 0x107   :  { %v176_v32 = vpop.f32.mrf.mxu0 }
 0x108   :  { %v177_v33 = vadd.f32 %v176_v32, %v93_v31 }
 0x109   :  { %v555_v34 = vpop.f32.mrf.mxu0 }
 0x10a   :  { %674 = vtanh.f32 %v177_v33 }
 0x10b   :  { %v179_v35 = vpop.f32.mrf.mxu0 }
 0x10d   :  { %v556_v36 = vpop.f32.mrf.mxu0 }
 0x117   :  { %v675_v37 = vpop.eup %674 }
 0x118   :  { %v183_v39 = vpack.c.bf16 %v675_v37, %v675_v37 }
 0x11a   :  { %574 = vmatmul.mubr.bf16.vlgmr.msra.gmra.mxu1 %v183_v39 }
 0x11b   :  { %598 = vmatpush3.bf16.msra.mxu1 %v666_v38  ;;  %613 = vmatprep.mubr.msk.bf16.mxu1 %vm774_vm0, %v773_v0 }
 0x11c   :  { %599 = vmatprep.subr.bf16.mxu1 %v773_v0 }
 0x11f   :  { %600 = vmatpush3.bf16.msra.mxu1 %v667_v40 }
 0x120   :  { %601 = vmatprep.subr.bf16.mxu1 %v773_v0 }
 0x123   :  { %602 = vmatpush3.bf16.msra.mxu1 %v668_v41 }
 0x124   :  { %603 = vmatprep.subr.bf16.mxu1 %v773_v0 }
 0x127   :  { %v359_v45 = vpop.f32.mrf.mxu0  ;;  %604 = vmatpush3.bf16.msra.mxu1 %v669_v43 }
 0x128   :  { %v360_v47 = vadd.f32 %v359_v45, %v272_v44  ;;  %605 = vmatprep.subr.bf16.mxu1 %v773_v0 }
 0x129   :  { %v595_v48 = vpop.f32.mrf.mxu0 }
 0x12a   :  { %676 = vtanh.f32 %v360_v47 }
 0x12b   :  { %v362_v49 = vpop.f32.mrf.mxu0  ;;  %606 = vmatpush3.bf16.msra.mxu1 %v670_v46 }
 0x12c   :  { %607 = vmatprep.subr.bf16.mxu1 %v773_v0 }
 0x12d   :  { %v596_v51 = vpop.f32.mrf.mxu0 }
 0x12f   :  { %608 = vmatpush3.bf16.msra.mxu1 %v671_v50 }
 0x130   :  { %609 = vmatprep.subr.bf16.mxu1 %v773_v0 }
 0x133   :  { %610 = vmatpush3.bf16.msra.mxu1 %v672_v52 }
 0x134   :  { %611 = vmatprep.subr.bf16.mxu1 %v773_v0 }
 0x137   :  { %v677_v54 = vpop.eup %676  ;;  %612 = vmatpush3.bf16.msra.mxu1 %v673_v53 }
 0x138   :  { %v366_v55 = vpack.c.bf16 %v677_v54, %v677_v54 }
 0x13a   :  { %614 = vmatmul.mubr.bf16.vlgmr.msra.gmra.mxu1 %v366_v55 }
 0x1da   :  { %v254_v59 = vpop.f32.mrf.mxu1 }
 0x1db   :  { %v255_v60 = vadd.f32 %v254_v59, %v187_v58 }
 0x1dc   :  { %v575_v61 = vpop.f32.mrf.mxu1 }
 0x1dd   :  { %v262_v62 = vsel %vm89_vm1, %v255_v60, 0.0 }
 0x1de   :  { %v257_v63 = vpop.f32.mrf.mxu1  ;;  %v263_v1 = vmul.f32 %v262_v62, %v262_v62 }
 0x1e0   :  { %264 = vadd.xlane.f32.xlu0 %v263_v1  ;;  %v576_v2 = vpop.f32.mrf.mxu1 }
 0x1fa   :  { %v437_v5 = vpop.f32.mrf.mxu1 }
 0x1fb   :  { %v438_v0 = vadd.f32 %v437_v5, %v370_v4 }
 0x1fc   :  { %v615_v6 = vpop.f32.mrf.mxu1 }
 0x1fd   :  { %v443_v7 = vsel %vm89_vm1, %v438_v0, 0.0 }
 0x1fe   :  { %v440_v8 = vpop.f32.mrf.mxu1  ;;  %v444_v9 = vmul.f32 %v443_v7, %v443_v7 }
 0x200   :  { %445 = vadd.xlane.f32.xlu0 %v444_v9  ;;  %v616_v10 = vpop.f32.mrf.mxu1 }
 0x269   :  { %v265_v11 = vpop.xlane.xlu0 %264 }
 0x26a   :  { %v266_v12 = vmax.f32 %v265_v11, 1e-24 }
 0x26c   :  { %678 = vrsqrt.f32 %v266_v12 }
 0x279   :  { %v679_v13 = vpop.eup %678 }
 0x27a   :  { %v268_v14 = vmul.f32 %v679_v13, %v262_v62 }
 0x27c   :  { %450 = vst [vmem:[#allocation8] sm:$0xff] %v268_v14 }
 0x289   :  { %v446_v15 = vpop.xlane.xlu0 %445 }
 0x28a   :  { %v447_v16 = vmax.f32 %v446_v15, 1e-24 }
 0x28c   :  { %680 = vrsqrt.f32 %v447_v16 }
 0x299   :  { %v681_v17 = vpop.eup %680 }
 0x29a   :  { %v449_v18 = vmul.f32 %v681_v17, %v443_v7 }
 0x29c   :  { %451 = vst [vmem:[#allocation8 + $0x8] sm:$0xff] %v449_v18 }
 0x29d   :  { %753 = shalt.err (!%p750_p5)
}
 0x29e   :  { %461 = dma.vmem_to_hbm [thread:$0]  %s459_s2, 256, %s851_s3, [#allocation4]  }
 0x29f   :  { %766 = dma.done.wait [#allocation4], 256  }
 0x2a0   :  { %767 = vsyncadd [#allocation4], 4294967040 }
 0x2a1   :  { %465 = vsyncpa [#allocation3], 1 }
 0x2a2   :  { %466 = vsyncpa [#allocation6], 1 }
 0x2a3   :  { %467 = vsyncpa [#allocation4], 1 }

</bundles_post_ra>
